<compile_context>
chip_gen: v7x
topology: tpu7x:2x2x1
jax: 0.10.0
libtpu: 0.0.40
codegen_flags: <defaults>
</compile_context>

<pallas_src>
import numpy as np
import jax
import jax.numpy as jnp
from jax import lax
from jax.experimental import pallas as pl
from jax.experimental.pallas import tpu as pltpu


# ----------------------------------------------------------------------------
# cv2.getGaussianKernel(ksize, -1) replicated in numpy (no cv2 dependency).
# OpenCV uses a fixed "small gaussian" table for sigma<=0 and ksize in {1,3,5,7},
# otherwise the normalized Gaussian with sigma = 0.3*((ksize-1)*0.5 - 1) + 0.8.
# ----------------------------------------------------------------------------
_SMALL_GAUSSIAN_TAB = {
    1: [1.0],
    3: [0.25, 0.5, 0.25],
    5: [0.0625, 0.25, 0.375, 0.25, 0.0625],
    7: [0.03125, 0.109375, 0.21875, 0.28125, 0.21875, 0.109375, 0.03125],
}


def cv2_gaussian_kernel1d(ksize, sigma=-1.0):
    if sigma <= 0 and ksize in _SMALL_GAUSSIAN_TAB:
        return np.asarray(_SMALL_GAUSSIAN_TAB[ksize], dtype=np.float64)
    s = sigma if sigma > 0 else 0.3 * ((ksize - 1) * 0.5 - 1) + 0.8
    xs = np.arange(ksize, dtype=np.float64) - (ksize - 1) * 0.5
    k = np.exp(-(xs * xs) / (2.0 * s * s))
    return k / k.sum()


# ----------------------------------------------------------------------------
# Pallas kernel factory
# ----------------------------------------------------------------------------
def _make_blur_kernel(taps, pad, h, w):
    """Separable, symmetric Gaussian blur with the replicate halo fused in."""
    center = float(taps[pad])
    side = [float(taps[pad - t]) for t in range(1, pad + 1)]  # == taps[pad + t]

    def _cshift(p, o):
        # result[..., j] = p[..., clip(j + o, 0, w - 1)]   (lane-axis clamp shift)
        if o == 0:
            return p
        if o < 0:
            return jnp.concatenate([p[..., 0:1]] * (-o) + [p[..., : w + o]],
                                   axis=-1)
        return jnp.concatenate([p[..., o:]] + [p[..., w - 1:w]] * o, axis=-1)

    def kernel(x_ref, o_ref, hbuf):
        # x_ref : (p_blk, H, W) unpadded planes (halo is fused below)
        # o_ref : (p_blk, H, W)
        # hbuf  : (p_blk, H + 2*pad, W) f32 scratch for the horizontal-pass result
        x = x_ref[...].astype(jnp.float32)

        # Pass 1 -- horizontal blur along the lane axis (W), clamped edges,
        # symmetric taps paired: center + sum_t k[t] * (left_t + right_t).
        acc = center * x
        for t in range(1, pad + 1):
            acc = acc + side[t - 1] * (_cshift(x, -t) + _cshift(x, t))

        # Stage the intermediate in VMEM with explicitly replicated edge rows,
        # so the vertical pass reads contiguous sublane windows (plain vlds).
        hbuf[:, pad:pad + h, :] = acc
        for t in range(1, pad + 1):
            hbuf[:, pad - t:pad - t + 1, :] = acc[:, 0:1, :]
            hbuf[:, pad + h + t - 1:pad + h + t, :] = acc[:, h - 1:h, :]

        # Pass 2 -- vertical blur along the sublane axis (H).
        out = center * acc
        for t in range(1, pad + 1):
            out = out + side[t - 1] * (hbuf[:, pad - t:pad - t + h, :] +
                                       hbuf[:, pad + t:pad + t + h, :])

        o_ref[...] = out.astype(o_ref.dtype)

    return kernel


# ----------------------------------------------------------------------------
# Wrapper
# ----------------------------------------------------------------------------
def gaussian_smooth(x, kernel_size=5, sigma=-1.0):
    """x: (N, C, H, W).  Matches GaussianSmoother.forward:
    replicate pad by (k-1)//2, depthwise conv with outer(k1d, k1d), groups=C."""
    n, c, h, w = x.shape
    ksize = int(kernel_size)
    pad = (ksize - 1) // 2
    if h <= pad or w <= pad:
        raise ValueError("spatial dims must exceed the blur half-width")

    taps = cv2_gaussian_kernel1d(ksize, sigma)   # host constants -> immediates

    p_total = n * c
    x3 = x.reshape(p_total, h, w)                # free metadata reshape

    # Pick the plane-block size: biggest block under a per-step VMEM budget,
    # but keep >=2 grid steps (v7x has 2 TensorCores) and keep blocks full.
    plane_bytes = h * w * 4
    budget = 24 * 1024 * 1024
    p_blk = max(1, min(p_total, budget // (7 * plane_bytes)))
    if p_total >= 2:
        p_blk = min(p_blk, max(1, p_total // 2))
    while p_total % p_blk:
        p_blk -= 1
    grid = (p_total // p_blk,)

    # in (x2 buffered) + out (x2 buffered) + halo'd scratch + slack.
    est_vmem = p_blk * (4 * plane_bytes + (h + 2 * pad) * w * 4) + 2 * plane_bytes
    vmem_limit = int(min(100 * 1024 * 1024,
                         max(32 * 1024 * 1024, 2 * est_vmem)))

    flops_per_elt = 2 * (1 + 3 * pad)            # two separable symmetric passes
    cost = pl.CostEstimate(
        flops=int(p_total * h * w * flops_per_elt),
        transcendentals=0,
        bytes_accessed=int(2 * p_total * plane_bytes))

    out3 = pl.pallas_call(
        _make_blur_kernel(taps, pad, h, w),
        out_shape=jax.ShapeDtypeStruct((p_total, h, w), x.dtype),
        grid_spec=pltpu.PrefetchScalarGridSpec(
            num_scalar_prefetch=0,
            grid=grid,
            in_specs=[pl.BlockSpec((p_blk, h, w), lambda i: (i, 0, 0))],
            out_specs=pl.BlockSpec((p_blk, h, w), lambda i: (i, 0, 0)),
            scratch_shapes=[pltpu.VMEM((p_blk, h + 2 * pad, w), jnp.float32)],
        ),
        compiler_params=pltpu.CompilerParams(
            dimension_semantics=("parallel",),
            vmem_limit_bytes=vmem_limit),
        cost_estimate=cost,
    )(x3)

    return out3.reshape(n, c, h, w)


# ----------------------------------------------------------------------------
# Pure-JAX reference: replicate pad + depthwise (groups=C) 2-D conv, exactly as
# the PyTorch module does it.
# ----------------------------------------------------------------------------
def _reference(x, kernel_size=5, sigma=-1.0):
    n, c, h, w = x.shape
    ksize = int(kernel_size)
    pad = (ksize - 1) // 2
    k1d = jnp.asarray(cv2_gaussian_kernel1d(ksize, sigma), dtype=x.dtype)
    xp = jnp.pad(x, ((0, 0), (0, 0), (pad, pad), (pad, pad)), mode="edge")
    k2d = jnp.outer(k1d, k1d)
    wgt = jnp.broadcast_to(k2d, (c, 1, ksize, ksize)).astype(x.dtype)
    return lax.conv_general_dilated(
        xp, wgt, window_strides=(1, 1), padding="VALID",
        dimension_numbers=("NCHW", "OIHW", "NCHW"),
        feature_group_count=c)


if __name__ == "__main__":
    KSIZE = 5                       # module default kernel_size=5
    N, C, H, W = 2, 3, 16, 16       # GaussianSmoother is hard-wired to 3 channels

    key = jax.random.PRNGKey(0)
    x = jax.random.normal(key, (N, C, H, W), dtype=jnp.float32)

    out = gaussian_smooth(x, KSIZE)
    out = jax.block_until_ready(out)

    ref = _reference(x, KSIZE)
    assert out.shape == ref.shape == (N, C, H, W), (out.shape, ref.shape)
    assert jnp.allclose(out, ref, rtol=1e-5, atol=1e-5), float(
        jnp.max(jnp.abs(out - ref)))

    print("KERNEL_OK")
</pallas_src>

<mosaic_0001>
module attributes {stable_mosaic.version = 11 : i64} {
  func.func @kernel(%arg0: i32, %arg1: memref<3x16x16xf32, #tpu.memory_space<vmem>>, %arg2: memref<3x16x16xf32, #tpu.memory_space<vmem>>, %arg3: memref<3x20x16xf32, #tpu.memory_space<vmem>>) attributes {dimension_semantics = [#tpu.dimension_semantics<parallel>], iteration_bounds = array<i64: 2>, scalar_prefetch = 0 : i64, scratch_operands = 1 : i64, tpu.core_type = #tpu.core_type<tc>, window_params = [{transform_indices = @transform_0, window_bounds = array<i64: 3, 16, 16>}, {transform_indices = @transform_1, window_bounds = array<i64: 3, 16, 16>}]} {
    %c0 = arith.constant 0 : index
    %c0_0 = arith.constant 0 : index
    %c0_1 = arith.constant 0 : index
    %0 = vector.load %arg1[%c0, %c0_0, %c0_1] : memref<3x16x16xf32, #tpu.memory_space<vmem>>, vector<3x16x16xf32>
    %cst = arith.constant 3.750000e-01 : f32
    %1 = vector.broadcast %cst : f32 to vector<3x16x16xf32>
    %2 = arith.mulf %1, %0 : vector<3x16x16xf32>
    %3 = vector.extract_strided_slice %0 {offsets = [0, 0, 0], sizes = [3, 16, 1], strides = [1, 1, 1]} : vector<3x16x16xf32> to vector<3x16x1xf32>
    %4 = vector.extract_strided_slice %0 {offsets = [0, 0, 0], sizes = [3, 16, 15], strides = [1, 1, 1]} : vector<3x16x16xf32> to vector<3x16x15xf32>
    %5 = tpu.concatenate %3, %4 in 2 : vector<3x16x1xf32>, vector<3x16x15xf32> -> vector<3x16x16xf32>
    %6 = vector.extract_strided_slice %0 {offsets = [0, 0, 1], sizes = [3, 16, 15], strides = [1, 1, 1]} : vector<3x16x16xf32> to vector<3x16x15xf32>
    %7 = vector.extract_strided_slice %0 {offsets = [0, 0, 15], sizes = [3, 16, 1], strides = [1, 1, 1]} : vector<3x16x16xf32> to vector<3x16x1xf32>
    %8 = tpu.concatenate %6, %7 in 2 : vector<3x16x15xf32>, vector<3x16x1xf32> -> vector<3x16x16xf32>
    %9 = arith.addf %5, %8 : vector<3x16x16xf32>
    %cst_2 = arith.constant 2.500000e-01 : f32
    %10 = vector.broadcast %cst_2 : f32 to vector<3x16x16xf32>
    %11 = arith.mulf %10, %9 : vector<3x16x16xf32>
    %12 = arith.addf %2, %11 : vector<3x16x16xf32>
    %13 = vector.extract_strided_slice %0 {offsets = [0, 0, 0], sizes = [3, 16, 1], strides = [1, 1, 1]} : vector<3x16x16xf32> to vector<3x16x1xf32>
    %14 = vector.extract_strided_slice %0 {offsets = [0, 0, 0], sizes = [3, 16, 14], strides = [1, 1, 1]} : vector<3x16x16xf32> to vector<3x16x14xf32>
    %15 = tpu.concatenate %13, %13, %14 in 2 : vector<3x16x1xf32>, vector<3x16x1xf32>, vector<3x16x14xf32> -> vector<3x16x16xf32>
    %16 = vector.extract_strided_slice %0 {offsets = [0, 0, 2], sizes = [3, 16, 14], strides = [1, 1, 1]} : vector<3x16x16xf32> to vector<3x16x14xf32>
    %17 = vector.extract_strided_slice %0 {offsets = [0, 0, 15], sizes = [3, 16, 1], strides = [1, 1, 1]} : vector<3x16x16xf32> to vector<3x16x1xf32>
    %18 = tpu.concatenate %16, %17, %17 in 2 : vector<3x16x14xf32>, vector<3x16x1xf32>, vector<3x16x1xf32> -> vector<3x16x16xf32>
    %19 = arith.addf %15, %18 : vector<3x16x16xf32>
    %cst_3 = arith.constant 6.250000e-02 : f32
    %20 = vector.broadcast %cst_3 : f32 to vector<3x16x16xf32>
    %21 = arith.mulf %20, %19 : vector<3x16x16xf32>
    %22 = arith.addf %12, %21 : vector<3x16x16xf32>
    %c0_4 = arith.constant 0 : index
    %c2 = arith.constant 2 : index
    %c0_5 = arith.constant 0 : index
    %23 = vector.load %arg3[%c0_4, %c2, %c0_5] : memref<3x20x16xf32, #tpu.memory_space<vmem>>, vector<3x16x16xf32>
    tpu.vector_store %arg3[%c0_4, %c2, %c0_5], %22 {strides = array<i32>} : memref<3x20x16xf32, #tpu.memory_space<vmem>>, vector<3x16x16xf32>,
    %24 = vector.extract_strided_slice %22 {offsets = [0, 0, 0], sizes = [3, 1, 16], strides = [1, 1, 1]} : vector<3x16x16xf32> to vector<3x1x16xf32>
    %c0_6 = arith.constant 0 : index
    %c1 = arith.constant 1 : index
    %c0_7 = arith.constant 0 : index
    %25 = vector.load %arg3[%c0_6, %c1, %c0_7] : memref<3x20x16xf32, #tpu.memory_space<vmem>>, vector<3x1x16xf32>
    tpu.vector_store %arg3[%c0_6, %c1, %c0_7], %24 {strides = array<i32>} : memref<3x20x16xf32, #tpu.memory_space<vmem>>, vector<3x1x16xf32>,
    %26 = vector.extract_strided_slice %22 {offsets = [0, 15, 0], sizes = [3, 1, 16], strides = [1, 1, 1]} : vector<3x16x16xf32> to vector<3x1x16xf32>
    %c0_8 = arith.constant 0 : index
    %c18 = arith.constant 18 : index
    %c0_9 = arith.constant 0 : index
    %27 = vector.load %arg3[%c0_8, %c18, %c0_9] : memref<3x20x16xf32, #tpu.memory_space<vmem>>, vector<3x1x16xf32>
    tpu.vector_store %arg3[%c0_8, %c18, %c0_9], %26 {strides = array<i32>} : memref<3x20x16xf32, #tpu.memory_space<vmem>>, vector<3x1x16xf32>,
    %28 = vector.extract_strided_slice %22 {offsets = [0, 0, 0], sizes = [3, 1, 16], strides = [1, 1, 1]} : vector<3x16x16xf32> to vector<3x1x16xf32>
    %c0_10 = arith.constant 0 : index
    %c0_11 = arith.constant 0 : index
    %c0_12 = arith.constant 0 : index
    %29 = vector.load %arg3[%c0_10, %c0_11, %c0_12] : memref<3x20x16xf32, #tpu.memory_space<vmem>>, vector<3x1x16xf32>
    tpu.vector_store %arg3[%c0_10, %c0_11, %c0_12], %28 {strides = array<i32>} : memref<3x20x16xf32, #tpu.memory_space<vmem>>, vector<3x1x16xf32>,
    %30 = vector.extract_strided_slice %22 {offsets = [0, 15, 0], sizes = [3, 1, 16], strides = [1, 1, 1]} : vector<3x16x16xf32> to vector<3x1x16xf32>
    %c0_13 = arith.constant 0 : index
    %c19 = arith.constant 19 : index
    %c0_14 = arith.constant 0 : index
    %31 = vector.load %arg3[%c0_13, %c19, %c0_14] : memref<3x20x16xf32, #tpu.memory_space<vmem>>, vector<3x1x16xf32>
    tpu.vector_store %arg3[%c0_13, %c19, %c0_14], %30 {strides = array<i32>} : memref<3x20x16xf32, #tpu.memory_space<vmem>>, vector<3x1x16xf32>,
    %cst_15 = arith.constant 3.750000e-01 : f32
    %32 = vector.broadcast %cst_15 : f32 to vector<3x16x16xf32>
    %33 = arith.mulf %32, %22 : vector<3x16x16xf32>
    %c0_16 = arith.constant 0 : index
    %c1_17 = arith.constant 1 : index
    %c0_18 = arith.constant 0 : index
    %34 = vector.load %arg3[%c0_16, %c1_17, %c0_18] : memref<3x20x16xf32, #tpu.memory_space<vmem>>, vector<3x16x16xf32>
    %c0_19 = arith.constant 0 : index
    %c3 = arith.constant 3 : index
    %c0_20 = arith.constant 0 : index
    %35 = vector.load %arg3[%c0_19, %c3, %c0_20] : memref<3x20x16xf32, #tpu.memory_space<vmem>>, vector<3x16x16xf32>
    %36 = arith.addf %34, %35 : vector<3x16x16xf32>
    %cst_21 = arith.constant 2.500000e-01 : f32
    %37 = vector.broadcast %cst_21 : f32 to vector<3x16x16xf32>
    %38 = arith.mulf %37, %36 : vector<3x16x16xf32>
    %39 = arith.addf %33, %38 : vector<3x16x16xf32>
    %c0_22 = arith.constant 0 : index
    %c0_23 = arith.constant 0 : index
    %c0_24 = arith.constant 0 : index
    %40 = vector.load %arg3[%c0_22, %c0_23, %c0_24] : memref<3x20x16xf32, #tpu.memory_space<vmem>>, vector<3x16x16xf32>
    %c0_25 = arith.constant 0 : index
    %c4 = arith.constant 4 : index
    %c0_26 = arith.constant 0 : index
    %41 = vector.load %arg3[%c0_25, %c4, %c0_26] : memref<3x20x16xf32, #tpu.memory_space<vmem>>, vector<3x16x16xf32>
    %42 = arith.addf %40, %41 : vector<3x16x16xf32>
    %cst_27 = arith.constant 6.250000e-02 : f32
    %43 = vector.broadcast %cst_27 : f32 to vector<3x16x16xf32>
    %44 = arith.mulf %43, %42 : vector<3x16x16xf32>
    %45 = arith.addf %39, %44 : vector<3x16x16xf32>
    %c0_28 = arith.constant 0 : index
    %c0_29 = arith.constant 0 : index
    %c0_30 = arith.constant 0 : index
    %46 = vector.load %arg2[%c0_28, %c0_29, %c0_30] : memref<3x16x16xf32, #tpu.memory_space<vmem>>, vector<3x16x16xf32>
    tpu.vector_store %arg2[%c0_28, %c0_29, %c0_30], %45 {strides = array<i32>} : memref<3x16x16xf32, #tpu.memory_space<vmem>>, vector<3x16x16xf32>,
    return
  }
  func.func @transform_0(%arg0: i32) -> (i32, i32, i32) {
    %c0_i32 = arith.constant 0 : i32
    %c0_i32_0 = arith.constant 0 : i32
    %c0_i32_1 = arith.constant 0 : i32
    return %arg0, %c0_i32, %c0_i32_0 : i32, i32, i32
  }
  func.func @transform_1(%arg0: i32) -> (i32, i32, i32) {
    %c0_i32 = arith.constant 0 : i32
    %c0_i32_0 = arith.constant 0 : i32
    %c0_i32_1 = arith.constant 0 : i32
    return %arg0, %c0_i32, %c0_i32_0 : i32, i32, i32
  }
}

</mosaic_0001>

<bundles_post_ra>
// kernel: tpu_custom_call.1
= control target key start
LH: loop header
LB: loop body
LE: loop exit
PB: predicated region body
PF: predicated region fallthrough
CT: control target
= control target key end

     0   :  { %6 = vsyncpa [#allocation4], 0  ;;  %s949_s0 = inlined_call_operand.hbm [shape: f32[6,16,16], index: 0, kind: input, shape index: {}]   ;;  %s950_s1 = inlined_call_operand.hbm [shape: f32[6,16,16], index: 1, kind: output, shape index: {}]  }
   0x1   :  { %8 = vsyncpa [#allocation4 + $0x1], 0 }
   0x2   :  { %9 = vsyncpa [#allocation5], 0 }
   0x3   :  { %11 = vsyncpa [#allocation5 + $0x1], 0  ;;  %s669_s6 = smov 0   ;;  %s671_s7 = smov 0  }
   0x4   :  { %s673_s8 = smov 0   ;;  %s675_s9 = smov 0  }
   0x5 LB: > { %s690_s10 = sadd.s32 4294967295, %s647_s9   ;;  %s479_s11 = sadd.s32 4294967294, %s647_s9   ;;  %s647_s9 = sphi %s675_s9, %s962_s9   ;;  %s643_s8 = sphi %s673_s8, %s961_s8   ;;  %s639_s7 = sphi %s671_s7, %s960_s7   ;;  %s635_s6 = sphi %s669_s6, %s959_s6  }
   0x6   : > { %s694_s12 = sadd.s32 1, %s647_s9   ;;  %s24_s13 = sadd.s32 1, %s643_s8 }
   0x7   : > { %s21_s14 = ssub.s32 %s647_s9, %s694_s12  ;;  %p31_p0 = scmp.ne.s32.totalorder %s643_s8, %s639_s7 }
   0x8   : > { %p22_p1 = scmp.eq.s32.totalorder %s21_s14, 0  ;;  %p32_p2 = scmp.eq.s32.totalorder %s647_s9, 0 }
   0x9   : > { %p37_p3 = scmp.ne.s32.totalorder %s639_s7, %s635_s6  ;;  %p38_p4 = scmp.eq.s32.totalorder %s690_s10, 0 }
   0xa   : > { %s706_s15 = scalar_select %p22_p1, %s643_s8, %s24_s13  }
   0xb   : > { %p33_p5 = por %p32_p2, %p31_p0  ;;  %p708_p6 = por %p38_p4, %p37_p3 }
   0xc   : > { %p61_p7 = scmp.eq.s32.totalorder %s690_s10, 1  ;;  %p67_p8 = scmp.eq.s32.totalorder %s479_s11, 1 }
   0xd   : > { %p509_p10 = scmp.lt.s32.totalorder %s647_s9, 2  ;;  %s87_s19 = sand.u32 1, %s643_s8  }
   0xe   : > { %p715_p11 = por %p61_p7, %p31_p0  ;;  %p719_p12 = por %p67_p8, %p37_p3 }
   0xf   : > { %s493_s20 = smul.u32 768, %s647_s9  ;;  %p730_p13 = pnand %p509_p10, %p33_p5 }
  0x10   : > { %s953_s17 = scalar_select %p715_p11, 1, 0 }
  0x11   : > { %s954_s18 = scalar_select %p719_p12, 1, 0 }
  0x12   : > { %s495_s21 = smul.u32 48, %s87_s19  ;;  %s728_s24 = scalar_lea.hbm %s949_s0, %s493_s20 }
  0x13   : > { %s736_s28 = scalar_lea.sflag [#allocation4], %s87_s19  ;;  %s551_s29 = scalar_lea.hbm %s728_s24, 768 }
  0x14   : > { %s91_s26 = scalar_lea.vmem [#allocation3], %s495_s21  ;;  %p552_p0 = scmp.ne.s32.totalorder %s728_s24, %s551_s29 }
  0x15   : > { %s99_s27 = sshll.u32 %s91_s26, 4  ;;  %p553_p1 = pneg %p730_p13  ;;  %s734_s27 = int_to_ptr.vmem [resolvable:$true] %s99_s27 }
  0x16   : > { %s556_s3 = scalar_lea.hbm %s949_s0, 1536  ;;  %p557_p4 = scmp.lt.u32.totalorder %s728_s24, %s949_s0 }
  0x17   : > { %p554_p2 = pnand %p553_p1, %p552_p0  ;;  %p558_p5 = scmp.lt.u32.totalorder %s556_s3, %s551_s29 }
  0x18   : > { %p560_p8 = scmp.lt.u32.totalorder %s551_s29, %s728_s24 }
  0x19   : > { %p555_p3 = pneg %p554_p2  ;;  %p559_p7 = por %p558_p5, %p557_p4 }
  0x1b   : > { %p561_p10 = por %p560_p8, %p559_p7 }
  0x1d   : > { %p562_p9 = pnand %p561_p10, %p555_p3 }
  0x1f   : > { %565 = shalt.err (!%p562_p9)
}
  0x20   : > { %s566_s11 = scalar_lea.vmem %s734_s27, 768  ;;  %s649_s13 = smov [#allocation3]  }
  0x21   : > { %p567_p0 = scmp.ne.s32.totalorder %s734_s27, %s566_s11  ;;  %s571_s14 = sshll.u32 %s649_s13, 4  ;;  %s572_s14 = int_to_ptr.vmem [resolvable:$false] %s571_s14 }
  0x22   : > { %s573_s19 = scalar_lea.vmem %s572_s14, 1536  ;;  %p574_p11 = scmp.lt.s32.totalorder %s734_s27, %s572_s14 }
  0x23   : > { %p569_p2 = pnand %p567_p0, %p553_p1  ;;  %p575_p4 = scmp.lt.s32.totalorder %s573_s19, %s566_s11 }
  0x25   : > { %p570_p12 = pneg %p569_p2  ;;  %p576_p5 = por %p575_p4, %p574_p11 }
  0x27   : > { %p577_p7 = pnand %p576_p5, %p570_p12 }
  0x29   : > { %580 = shalt.err (!%p577_p7)
}
  0x2a   : > { %s650_s20 = smov 128   ;;  %s651_s21 = smov 8  }
  0x2b   : > { %504 = dma.hbm_to_vmem [thread:$0]  (!%p730_p13), %s728_s24, 768, %s734_s27, %s736_s28, %s650_s20, %s650_s20, %s651_s21  }
  0x2c   : > { %p484_p9 = scmp.ge.s32.totalorder %s647_s9, 1  ;;  %p107_p1 = scmp.lt.s32.totalorder %s647_s9, 3 }
  0x2e   : > { %p108_p3 = pnand %p484_p9, %p107_p1 }
  0x2f   : > { %s767_s22 = sand.u32 (!%p108_p3), 1, %s639_s7  }
  0x30   : > { %111 = sbr.rel (%p108_p3) target bundleno = 258 (0x102), region = 24  ;;  %s114_s26 = scalar_lea.sflag (!%p108_p3), [#allocation4], %s767_s22 }
  0x31   : > { %s496_s23 = smul.u32 (!%p108_p3), 48, %s767_s22 }
  0x33   : > { %s117_s29 = scalar_lea.vmem (!%p108_p3), [#allocation3], %s496_s23 }
  0x37   : > { %626 = dma.done.wait (%p708_p6), %s114_s26, 768  }
  0x38   : > { %628 = vsyncadd (%p708_p6), %s114_s26, 4294966528  ;;  %v777_v0 = vld [vmem:[%s117_s29 + $0x10] sm:$0xff]  ;;  %v779_v1 = vld [vmem:[%s117_s29] sm:$0xff]  ;;  %s652_s24 = smov 1   ;;  %s653_s16 = smov 127   ;;  %vm199_vm0 = vcmask 121856  }
  0x39   : > { %160 = vrot.lane.b32.xlu1 %v777_v0, %s652_s24  ;;  %156 = vrot.lane.b32.xlu0 %v779_v1, %s652_s24  ;;  %v783_v2 = vld [vmem:[%s117_s29 + $0x18] sm:$0xff]  ;;  %v785_v3 = vld [vmem:[%s117_s29 + $0x8] sm:$0xff]  ;;  %s654_s25 = smov 126   ;;  %s655_s27 = smov 2   ;;  %vm174_vm1 = vcmask 7168   ;;  %vm267_vm2 = vcmask 113664  }
  0x3a   : > { %v789_v4 = vld [vmem:[%s117_s29 + $0x28] sm:$0xff]  ;;  %v791_v5 = vld [vmem:[%s117_s29 + $0x20] sm:$0xff]  ;;  %v145_v28 = vmul.f32 0.375, %v785_v3  ;;  %v144_v29 = vmul.f32 0.375, %v779_v1  ;;  %v147_v30 = vmul.f32 0.375, %v783_v2  ;;  %v146_v32 = vmul.f32 0.375, %v777_v0 }
  0x3b   : > { %vm242_vm3 = vcmask 15360   ;;  %vm298_vm4 = vcmask 130048   ;;  %vm309_vm5 = vcmask 130055   ;;  %vm305_vm6 = vcmask 122880   ;;  %s135_s28 = scalar_lea.vmem [#allocation6], %s496_s23  ;;  %s494_s30 = smul.u32 768, %s690_s10 }
  0x3c   : > { %s406_s2 = sshll.u32 %s135_s28, 4  ;;  %s392_s10 = scalar_lea.sflag [#allocation5], %s767_s22  ;;  %s903_s2 = int_to_ptr.vmem [resolvable:$true] %s406_s2 }
  0x3d   : > { %162 = vrot.lane.b32.xlu1 %v783_v2, %s652_s24  ;;  %158 = vrot.lane.b32.xlu0 %v785_v3, %s652_s24  ;;  %s901_s5 = scalar_lea.hbm %s950_s1, %s494_s30  ;;  %s581_s11 = scalar_lea.vmem %s903_s2, 768 }
  0x3e   : > { %p582_p6 = scmp.ne.s32.totalorder %s903_s2, %s581_s11  ;;  %p956_p11 = scmp.ne.s32.totalorder %s953_s17, 0 }
  0x3f   : > { %s656_s13 = smov [#allocation6]  }
  0x40   : > { %p583_p12 = pnand %p582_p6, %p956_p11  ;;  %s585_s14 = sshll.u32 %s656_s13, 4  ;;  %s586_s14 = int_to_ptr.vmem [resolvable:$false] %s585_s14 }
  0x41   : > { %166 = vrot.lane.b32.xlu1 %v789_v4, %s652_s24  ;;  %164 = vrot.lane.b32.xlu0 %v791_v5, %s652_s24  ;;  %s587_s19 = scalar_lea.vmem %s586_s14, 1536  ;;  %p588_p8 = scmp.lt.s32.totalorder %s903_s2, %s586_s14 }
  0x42   : > { %p584_p13 = pneg %p583_p12  ;;  %p589_p10 = scmp.lt.s32.totalorder %s587_s19, %s581_s11 }
  0x44   : > { %p590_p0 = por %p589_p10, %p588_p8 }
  0x45   : > { %183 = vrot.lane.b32.xlu1 %v785_v3, %s653_s16  ;;  %181 = vrot.lane.b32.xlu0 %v779_v1, %s653_s16 }
  0x46   : > { %p591_p2 = pnand %p590_p0, %p584_p13 }
  0x49   : > { %187 = vrot.lane.b32.xlu1 %v783_v2, %s653_s16  ;;  %185 = vrot.lane.b32.xlu0 %v777_v0, %s653_s16 }
  0x4d   : > { %191 = vrot.lane.b32.xlu1 %v789_v4, %s653_s16  ;;  %189 = vrot.lane.b32.xlu0 %v791_v5, %s653_s16 }
  0x51   : > { %251 = vrot.lane.b32.xlu1 %v785_v3, %s654_s25  ;;  %249 = vrot.lane.b32.xlu0 %v779_v1, %s654_s25 }
  0x55   : > { %255 = vrot.lane.b32.xlu1 %v783_v2, %s654_s25  ;;  %253 = vrot.lane.b32.xlu0 %v777_v0, %s654_s25 }
  0x59   : > { %259 = vrot.lane.b32.xlu1 %v789_v4, %s654_s25  ;;  %257 = vrot.lane.b32.xlu0 %v791_v5, %s654_s25 }
  0x5d   : > { %226 = vrot.lane.b32.xlu1 %v785_v3, %s655_s27  ;;  %224 = vrot.lane.b32.xlu0 %v779_v1, %s655_s27 }
  0x61   : > { %230 = vrot.lane.b32.xlu1 %v783_v2, %s655_s27  ;;  %228 = vrot.lane.b32.xlu0 %v777_v0, %s655_s27 }
  0x65   : > { %234 = vrot.lane.b32.xlu1 %v789_v4, %s655_s27  ;;  %232 = vrot.lane.b32.xlu0 %v791_v5, %s655_s27 }
  0xab   : > { %v161_v6 = vpop.permute.xlu1 %160  ;;  %v157_v7 = vpop.permute.xlu0 %156 }
  0xac   : > { %v175_v24 = vsel %vm174_vm1, %v779_v1, %v157_v7  ;;  %v177_v38 = vsel %vm174_vm1, %v777_v0, %v161_v6 }
  0xaf   : > { %v163_v8 = vpop.permute.xlu1 %162  ;;  %v159_v9 = vpop.permute.xlu0 %158 }
  0xb0   : > { %v176_v25 = vsel %vm174_vm1, %v785_v3, %v159_v9  ;;  %v178_v39 = vsel %vm174_vm1, %v783_v2, %v163_v8 }
  0xb3   : > { %v167_v10 = vpop.permute.xlu1 %166  ;;  %v165_v11 = vpop.permute.xlu0 %164 }
  0xb4   : > { %v180_v42 = vsel %vm174_vm1, %v789_v4, %v167_v10  ;;  %v179_v43 = vsel %vm174_vm1, %v791_v5, %v165_v11 }
  0xb7   : > { %v184_v12 = vpop.permute.xlu1 %183  ;;  %v182_v13 = vpop.permute.xlu0 %181 }
  0xb8   : > { %v201_v20 = vsel %vm199_vm0, %v184_v12, %v785_v3  ;;  %v200_v21 = vsel %vm199_vm0, %v182_v13, %v779_v1 }
  0xb9   : > { %v207_v26 = vadd.f32 %v201_v20, %v176_v25  ;;  %v206_v27 = vadd.f32 %v200_v21, %v175_v24 }
  0xbb   : > { %v188_v14 = vpop.permute.xlu1 %187  ;;  %v186_v15 = vpop.permute.xlu0 %185  ;;  %v213_v40 = vmul.f32 0.25, %v207_v26  ;;  %v212_v41 = vmul.f32 0.25, %v206_v27 }
  0xbc   : > { %v203_v31 = vsel %vm199_vm0, %v188_v14, %v783_v2  ;;  %v202_v33 = vsel %vm199_vm0, %v186_v15, %v777_v0 }
  0xbd   : > { %v209_v44 = vadd.f32 %v203_v31, %v178_v39  ;;  %v208_v45 = vadd.f32 %v202_v33, %v177_v38  ;;  %v219_v56 = vadd.f32 %v213_v40, %v145_v28  ;;  %v218_v57 = vadd.f32 %v212_v41, %v144_v29 }
  0xbf   : > { %v192_v16 = vpop.permute.xlu1 %191  ;;  %v190_v17 = vpop.permute.xlu0 %189  ;;  %v215_v60 = vmul.f32 0.25, %v209_v44  ;;  %v214_v61 = vmul.f32 0.25, %v208_v45 }
  0xc0   : > { %v205_v46 = vsel %vm199_vm0, %v192_v16, %v789_v4  ;;  %v204_v47 = vsel %vm199_vm0, %v190_v17, %v791_v5 }
  0xc1   : > { %v211_v62 = vadd.f32 %v205_v46, %v180_v42  ;;  %v210_v63 = vadd.f32 %v204_v47, %v179_v43  ;;  %v221_v20 = vadd.f32 %v215_v60, %v147_v30  ;;  %v220_v21 = vadd.f32 %v214_v61, %v146_v32 }
  0xc3   : > { %v252_v18 = vpop.permute.xlu1 %251  ;;  %v250_v19 = vpop.permute.xlu0 %249 }
  0xc4   : > { %v269_v36 = vsel %vm267_vm2, %v252_v18, %v184_v12  ;;  %v268_v37 = vsel %vm267_vm2, %v250_v19, %v182_v13 }
  0xc5   : > { %v275_v48 = vsel %vm199_vm0, %v269_v36, %v785_v3  ;;  %v274_v50 = vsel %vm199_vm0, %v268_v37, %v779_v1 }
  0xc7   : > { %v256_v22 = vpop.permute.xlu1 %255  ;;  %v254_v23 = vpop.permute.xlu0 %253 }
  0xc8   : > { %v271_v52 = vsel %vm267_vm2, %v256_v22, %v188_v14  ;;  %v270_v53 = vsel %vm267_vm2, %v254_v23, %v186_v15  ;;  %v148_v22 = vmul.f32 0.375, %v791_v5  ;;  %v216_v23 = vmul.f32 0.25, %v210_v63 }
  0xc9   : > { %v277_v1 = vsel %vm199_vm0, %v271_v52, %v783_v2  ;;  %v276_v8 = vsel %vm199_vm0, %v270_v53, %v777_v0  ;;  %v149_v2 = vmul.f32 0.375, %v789_v4  ;;  %v217_v0 = vmul.f32 0.25, %v211_v62 }
  0xcb   : > { %v260_v34 = vpop.permute.xlu1 %259  ;;  %v258_v35 = vpop.permute.xlu0 %257 }
  0xcc   : > { %v273_v10 = vsel %vm267_vm2, %v260_v34, %v192_v16  ;;  %v272_v11 = vsel %vm267_vm2, %v258_v35, %v190_v17  ;;  %v223_v34 = vadd.f32 %v217_v0, %v149_v2  ;;  %v222_v35 = vadd.f32 %v216_v23, %v148_v22 }
  0xcd   : > { %v279_v26 = vsel %vm199_vm0, %v273_v10, %v789_v4  ;;  %v278_v28 = vsel %vm199_vm0, %v272_v11, %v791_v5 }
  0xcf   : > { %v227_v49 = vpop.permute.xlu1 %226  ;;  %v225_v51 = vpop.permute.xlu0 %224 }
  0xd0   : > { %v244_v54 = vsel %vm242_vm3, %v176_v25, %v227_v49  ;;  %v243_v55 = vsel %vm242_vm3, %v175_v24, %v225_v51 }
  0xd1   : > { %v281_v58 = vadd.f32 %v275_v48, %v244_v54  ;;  %v280_v59 = vadd.f32 %v274_v50, %v243_v55 }
  0xd3   : > { %v287_v3 = vmul.f32 0.0625, %v281_v58  ;;  %v286_v6 = vmul.f32 0.0625, %v280_v59  ;;  %v231_v7 = vpop.permute.xlu1 %230  ;;  %v229_v9 = vpop.permute.xlu0 %228 }
  0xd4   : > { %v246_v12 = vsel %vm242_vm3, %v178_v39, %v231_v7  ;;  %v245_v13 = vsel %vm242_vm3, %v177_v38, %v229_v9 }
  0xd5   : > { %v293_v14 = vadd.f32 %v287_v3, %v219_v56  ;;  %v292_v15 = vadd.f32 %v286_v6, %v218_v57  ;;  %v283_v18 = vadd.f32 %v277_v1, %v246_v12  ;;  %v282_v19 = vadd.f32 %v276_v8, %v245_v13 }
  0xd7   : > { %300 = vst.msk [vmem:[#allocation2 + $0xa] sm:$0xff] %vm298_vm4, %v293_v14  ;;  %299 = vst.msk [vmem:[#allocation2 + $0x2] sm:$0xff] %vm298_vm4, %v292_v15  ;;  %v289_v16 = vmul.f32 0.0625, %v283_v18  ;;  %v288_v17 = vmul.f32 0.0625, %v282_v19  ;;  %v235_v24 = vpop.permute.xlu1 %234  ;;  %v233_v25 = vpop.permute.xlu0 %232  ;;  %v320_v48 = vmul.f32 0.375, %v293_v14  ;;  %v319_v51 = vmul.f32 0.375, %v292_v15 }
  0xd8   : > { %310 = vst.msk [vmem:[#allocation2 + $0xb] sm:$0x80] %vm309_vm5, %v293_v14  ;;  %316 = vst.msk [vmem:[#allocation2 + $0xc] sm:$0x80] %vm309_vm5, %v293_v14  ;;  %v248_v27 = vsel %vm242_vm3, %v180_v42, %v235_v24  ;;  %v247_v29 = vsel %vm242_vm3, %v179_v43, %v233_v25 }
  0xd9   : > { %306 = vst.msk [vmem:[#allocation2 + $0x1] sm:$0x1] %vm305_vm6, %v292_v15  ;;  %313 = vst.msk [vmem:[#allocation2] sm:$0x1] %vm305_vm6, %v292_v15  ;;  %v295_v30 = vadd.f32 %v289_v16, %v221_v20  ;;  %v294_v31 = vadd.f32 %v288_v17, %v220_v21  ;;  %v285_v32 = vadd.f32 %v279_v26, %v248_v27 }
  0xda   : > { %v284_v33 = vadd.f32 %v278_v28, %v247_v29 }
  0xdb   : > { %302 = vst.msk [vmem:[#allocation2 + $0x22] sm:$0xff] %vm298_vm4, %v295_v30  ;;  %301 = vst.msk [vmem:[#allocation2 + $0x1a] sm:$0xff] %vm298_vm4, %v294_v31  ;;  %v291_v4 = vmul.f32 0.0625, %v285_v32  ;;  %v322_v8 = vmul.f32 0.375, %v295_v30  ;;  %v321_v9 = vmul.f32 0.375, %v294_v31 }
  0xdc   : > { %311 = vst.msk [vmem:[#allocation2 + $0x23] sm:$0x80] %vm309_vm5, %v295_v30  ;;  %317 = vst.msk [vmem:[#allocation2 + $0x24] sm:$0x80] %vm309_vm5, %v295_v30  ;;  %v290_v5 = vmul.f32 0.0625, %v284_v33 }
  0xdd   : > { %307 = vst.msk [vmem:[#allocation2 + $0x19] sm:$0x1] %vm305_vm6, %v294_v31  ;;  %314 = vst.msk [vmem:[#allocation2 + $0x18] sm:$0x1] %vm305_vm6, %v294_v31  ;;  %v879_v36 = vadd.f32 %v291_v4, %v223_v34 }
  0xde   : > { %v296_v37 = vadd.f32 %v290_v5, %v222_v35  ;;  %v326_v41 = vld [vmem:[#allocation2 + $0x9] sm:$0xff] }
  0xdf   : > { %v332_v38 = vld [vmem:[#allocation2 + $0xb] sm:$0xff]  ;;  %v331_v42 = vld [vmem:[#allocation2 + $0x3] sm:$0xff]  ;;  %304 = vst.msk [vmem:[#allocation2 + $0x3a] sm:$0xff] %vm298_vm4, %v879_v36  ;;  %v324_v28 = vmul.f32 0.375, %v879_v36 }
  0xe0   : > { %v362_v39 = vld [vmem:[#allocation2 + $0xc] sm:$0xff]  ;;  %v325_v40 = vld [vmem:[#allocation2 + $0x1] sm:$0xff]  ;;  %312 = vst.msk [vmem:[#allocation2 + $0x3b] sm:$0x80] %vm309_vm5, %v879_v36  ;;  %318 = vst.msk [vmem:[#allocation2 + $0x3c] sm:$0x80] %vm309_vm5, %v879_v36  ;;  %v338_v45 = vadd.f32 %v332_v38, %v326_v41 }
  0xe1   : > { %v355_v43 = vld [vmem:[#allocation2] sm:$0xff]  ;;  %303 = vst.msk [vmem:[#allocation2 + $0x32] sm:$0xff] %vm298_vm4, %v296_v37  ;;  %v337_v44 = vadd.f32 %v331_v42, %v325_v40  ;;  %v356_v46 = vld [vmem:[#allocation2 + $0x8] sm:$0xff]  ;;  %v323_v29 = vmul.f32 0.375, %v296_v37 }
  0xe2   : > { %308 = vst.msk [vmem:[#allocation2 + $0x31] sm:$0x1] %vm305_vm6, %v296_v37  ;;  %315 = vst.msk [vmem:[#allocation2 + $0x30] sm:$0x1] %vm305_vm6, %v296_v37  ;;  %v361_v47 = vld [vmem:[#allocation2 + $0x4] sm:$0xff]  ;;  %v368_v50 = vadd.f32 %v362_v39, %v356_v46  ;;  %v344_v53 = vmul.f32 0.25, %v338_v45 }
  0xe3   : > { %v367_v49 = vadd.f32 %v361_v47, %v355_v43  ;;  %v343_v52 = vmul.f32 0.25, %v337_v44  ;;  %v334_v54 = vld [vmem:[#allocation2 + $0x23] sm:$0xff]  ;;  %v333_v59 = vld [vmem:[#allocation2 + $0x1b] sm:$0xff] }
  0xe4   : > { %v364_v55 = vld [vmem:[#allocation2 + $0x24] sm:$0xff]  ;;  %v327_v56 = vld [vmem:[#allocation2 + $0x19] sm:$0xff]  ;;  %v374_v61 = vmul.f32 0.0625, %v368_v50  ;;  %v350_v7 = vadd.f32 %v344_v53, %v320_v48 }
  0xe5   : > { %v373_v57 = vmul.f32 0.0625, %v367_v49  ;;  %v328_v58 = vld [vmem:[#allocation2 + $0x21] sm:$0xff]  ;;  %v357_v60 = vld [vmem:[#allocation2 + $0x18] sm:$0xff]  ;;  %v349_v62 = vadd.f32 %v343_v52, %v319_v51  ;;  %v339_v63 = vadd.f32 %v333_v59, %v327_v56 }
  0xe6   : > { %v340_v3 = vadd.f32 %v334_v54, %v328_v58  ;;  %v358_v6 = vld [vmem:[#allocation2 + $0x20] sm:$0xff]  ;;  %v380_v20 = vadd.f32 %v374_v61, %v350_v7 }
  0xe7   : > { %v363_v1 = vld [vmem:[#allocation2 + $0x1c] sm:$0xff]  ;;  %v370_v11 = vadd.f32 %v364_v55, %v358_v6  ;;  %v379_v12 = vadd.f32 %v373_v57, %v349_v62  ;;  %v345_v13 = vmul.f32 0.25, %v339_v63 }
  0xe8   : > { %v369_v10 = vadd.f32 %v363_v1, %v357_v60  ;;  %v346_v14 = vmul.f32 0.25, %v340_v3  ;;  %v336_v15 = vld [vmem:[#allocation2 + $0x3b] sm:$0xff]  ;;  %v335_v22 = vld [vmem:[#allocation2 + $0x33] sm:$0xff]  ;;  %386 = vst.msk [vmem:[%s135_s28 + $0x8] sm:$0xff] %vm298_vm4, %v380_v20 }
  0xe9   : > { %v366_v18 = vld [vmem:[#allocation2 + $0x3c] sm:$0xff]  ;;  %v329_v19 = vld [vmem:[#allocation2 + $0x31] sm:$0xff]  ;;  %v376_v23 = vmul.f32 0.0625, %v370_v11  ;;  %385 = vst.msk [vmem:[%s135_s28] sm:$0xff] %vm298_vm4, %v379_v12  ;;  %v351_v16 = vadd.f32 %v345_v13, %v321_v9 }
  0xea   : > { %v375_v21 = vmul.f32 0.0625, %v369_v10  ;;  %v330_v2 = vld [vmem:[#allocation2 + $0x39] sm:$0xff]  ;;  %v359_v0 = vld [vmem:[#allocation2 + $0x30] sm:$0xff]  ;;  %v341_v17 = vadd.f32 %v335_v22, %v329_v19  ;;  %v352_v27 = vadd.f32 %v346_v14, %v322_v8 }
  0xeb   : > { %v342_v24 = vadd.f32 %v336_v15, %v330_v2  ;;  %v360_v25 = vld [vmem:[#allocation2 + $0x38] sm:$0xff] }
  0xec   : > { %v365_v26 = vld [vmem:[#allocation2 + $0x34] sm:$0xff]  ;;  %v372_v31 = vadd.f32 %v366_v18, %v360_v25  ;;  %v381_v32 = vadd.f32 %v375_v21, %v351_v16  ;;  %v347_v33 = vmul.f32 0.25, %v341_v17  ;;  %v382_v35 = vadd.f32 %v376_v23, %v352_v27 }
  0xed   : > { %v371_v30 = vadd.f32 %v365_v26, %v359_v0  ;;  %v348_v34 = vmul.f32 0.25, %v342_v24 }
  0xee   : > { %387 = vst.msk [vmem:[%s135_s28 + $0x10] sm:$0xff] %vm298_vm4, %v381_v32  ;;  %v353_v4 = vadd.f32 %v347_v33, %v323_v29  ;;  %v378_v39 = vmul.f32 0.0625, %v372_v31  ;;  %388 = vst.msk [vmem:[%s135_s28 + $0x18] sm:$0xff] %vm298_vm4, %v382_v35 }
  0xef   : > { %v377_v5 = vmul.f32 0.0625, %v371_v30  ;;  %v354_v38 = vadd.f32 %v348_v34, %v324_v28 }
  0xf1   : > { %v383_v36 = vadd.f32 %v377_v5, %v353_v4  ;;  %v384_v37 = vadd.f32 %v378_v39, %v354_v38 }
  0xf3   : > { %389 = vst.msk [vmem:[%s135_s28 + $0x20] sm:$0xff] %vm298_vm4, %v383_v36  ;;  %390 = vst.msk [vmem:[%s135_s28 + $0x28] sm:$0xff] %vm298_vm4, %v384_v37 }
  0xf4   : > { %594 = shalt.err (!%p591_p2)
}
  0xf5   : > { %s595_s20 = scalar_lea.hbm %s901_s5, 768  ;;  %s599_s26 = scalar_lea.hbm %s950_s1, 1536 }
  0xf6   : > { %p596_p4 = scmp.ne.s32.totalorder %s901_s5, %s595_s20  ;;  %p600_p9 = scmp.lt.u32.totalorder %s901_s5, %s950_s1 }
  0xf7   : > { %p601_p1 = scmp.lt.u32.totalorder %s599_s26, %s595_s20  ;;  %p603_p6 = scmp.lt.u32.totalorder %s595_s20, %s901_s5 }
  0xf8   : > { %p597_p5 = pnand %p596_p4, %p956_p11 }
  0xf9   : > { %p602_p3 = por %p601_p1, %p600_p9 }
  0xfa   : > { %p598_p7 = pneg %p597_p5 }
  0xfb   : > { %p604_p12 = por %p603_p6, %p602_p3 }
  0xfd   : > { %p605_p13 = pnand %p604_p12, %p598_p7 }
  0xff   : > { %608 = shalt.err (!%p605_p13)
}
 0x100   : > { %s657_s16 = smov 128   ;;  %s658_s25 = smov 8  }
 0x101   : > { %499 = dma.vmem_to_hbm [thread:$0]  (%p956_p11), %s903_s2, 768, %s901_s5, %s392_s10, %s657_s16, %s657_s16, %s658_s25  }
 0x102 PF: > { %s421_s27 = sand.u32 1, %s635_s6   ;;  %p957_p8 = scmp.ne.s32.totalorder %s954_s18, 0 }
 0x103   : > { %p958_p10 = scmp.ge.s32.totalorder %s647_s9, 2  ;;  %s422_s28 = scalar_lea.sflag [#allocation5], %s421_s27 }
 0x105   : > { %p506_p0 = pnand %p958_p10, %p957_p8 }
 0x107   : > { %630 = dma.done.wait (!%p506_p0), %s422_s28, 768  }
 0x108   : > { %632 = vsyncadd (!%p506_p0), %s422_s28, 4294966528  ;;  %p14_p2 = scmp.ge.s32.totalorder %s694_s12, 4   ;;  %s959_s6 = smov %s639_s7 }
 0x109   : > { %s960_s7 = smov %s643_s8  ;;  %s961_s8 = smov %s706_s15 }
 0x10a   : > { %s962_s9 = smov %s694_s12  ;;  %16 = sbr.rel (!%p14_p2) target bundleno = 5 (0x5), region = 69 }
 0x111   :  { %427 = vsyncpa [#allocation4], 1 }
 0x112   :  { %429 = vsyncpa [#allocation4 + $0x1], 1 }
 0x113   :  { %430 = vsyncpa [#allocation5], 1 }
 0x114   :  { %432 = vsyncpa [#allocation5 + $0x1], 1 }

</bundles_post_ra>
